<compile_context>
chip_gen: v7x
topology: tpu7x:2x2x1
jax: 0.10.0
libtpu: 0.0.40
codegen_flags: <defaults>
</compile_context>

<pallas_src>
import math

import jax
import jax.numpy as jnp
from jax import lax
from jax.experimental import pallas as pl
from jax.experimental.pallas import tpu as pltpu

D_MODEL = 512
MAX_LEN = 5000
DROPOUT_P = 0.1

# Drop an element iff hash31(idx) < round(p * 2**31); keep prob = 1 - p.
_DROP_THRESHOLD_31 = int(round(DROPOUT_P * (1 << 31)))
_KEEP_SCALE = 1.0 / (1.0 - DROPOUT_P)


def _build_pe(max_len: int = MAX_LEN, d_model: int = D_MODEL) -> jnp.ndarray:
    """Sinusoidal table, identical math to the torch __init__.

    Returns shape (max_len, 1, d_model) == pe.unsqueeze(0).transpose(0, 1)."""
    position = jnp.arange(max_len, dtype=jnp.float32)[:, None]            # (L, 1)
    div_term = jnp.exp(
        jnp.arange(0, d_model, 2, dtype=jnp.float32)
        * (-math.log(10000.0) / d_model)
    )                                                                     # (D/2,)
    ang = position * div_term                                             # (L, D/2)
    # interleave: even cols = sin, odd cols = cos
    pe = jnp.stack([jnp.sin(ang), jnp.cos(ang)], axis=-1).reshape(max_len, d_model)
    return pe[:, None, :]                                                 # (L, 1, D)


_PE_TABLE = None


def _pe_table() -> jnp.ndarray:
    """Build the full PE table once and cache it (mirrors register_buffer)."""
    global _PE_TABLE
    if _PE_TABLE is None:
        _PE_TABLE = _build_pe()
    return _PE_TABLE


def _make_kernel(apply_dropout: bool, ts: int, batch: int, d_model: int):
    """Kernel over one (ts, batch, d_model) tile of x."""

    def kernel(seed_ref, x_ref, pe_ref, o_ref):
        # seed_ref : SMEM (1,)        int32
        # x_ref    : VMEM (ts, B, D)
        # pe_ref   : VMEM (ts, 1, D)  float32 -> broadcasts over batch
        # o_ref    : VMEM (ts, B, D)
        x = x_ref[...].astype(jnp.float32) + pe_ref[...]

        if apply_dropout:
            # Counter-based PRNG: hash(global element index, seed).  Pure VPU
            # integer ops (free filler on this HBM-bound kernel), and the
            # realized mask does not depend on the chosen tile size.
            # TODO(synk): RNG stream differs from torch's dropout RNG (keep
            # probability matches; the exact mask does not).
            shape = x_ref.shape
            row = lax.broadcasted_iota(jnp.int32, shape, 0).astype(jnp.uint32)
            col_b = lax.broadcasted_iota(jnp.int32, shape, 1).astype(jnp.uint32)
            col_d = lax.broadcasted_iota(jnp.int32, shape, 2).astype(jnp.uint32)
            i = pl.program_id(0).astype(jnp.uint32)
            pos = i * jnp.uint32(ts) + row                         # global seq position
            idx = (pos * jnp.uint32(batch) + col_b) * jnp.uint32(d_model) + col_d
            key = (seed_ref[0].astype(jnp.uint32) * jnp.uint32(0x9E3779B1)
                   + jnp.uint32(0x7F4A7C15))
            # murmur3 fmix32 finalizer.
            h = idx ^ key
            h = (h ^ (h >> 16)) * jnp.uint32(0x85EBCA6B)
            h = (h ^ (h >> 13)) * jnp.uint32(0xC2B2AE35)
            h = h ^ (h >> 16)
            # Integer-threshold compare (top 31 bits -> exact signed compare).
            keep = (h >> 1).astype(jnp.int32) >= jnp.int32(_DROP_THRESHOLD_31)
            x = jnp.where(keep, x * jnp.float32(_KEEP_SCALE), jnp.float32(0.0))

        o_ref[...] = x.astype(o_ref.dtype)

    return kernel


def positional_encoding_forward(
    x: jnp.ndarray,
    seed: int = 0,
    training: bool = True,
    block_bytes: int = 4 * 1024 * 1024,
) -> jnp.ndarray:
    """x: [seq_len, batch, d_model] -> same shape/dtype.

    training=True matches the torch module's default (train-mode dropout);
    training=False is the eval fast path (pure PE add, no RNG work)."""
    S, B, D = x.shape
    assert D == D_MODEL, "module hardcodes d_model=512"
    assert S <= MAX_LEN

    pe = _pe_table()                                   # (MAX_LEN, 1, D) float32
    seed_arr = jnp.asarray([seed], dtype=jnp.int32)

    # Tile enough sequence positions per grid step for ~block_bytes of x per
    # block (~4 MiB -> per-step overhead <~6% of the step's HBM traffic).
    # Double-buffered x-in + out + pe is ~4x block_bytes (~16.5 MiB), within
    # the explicit 32 MiB scoped-VMEM limit below on every generation.
    itemsize = jnp.dtype(x.dtype).itemsize
    ts = int(max(1, min(S, block_bytes // (B * D * itemsize))))
    grid = (pl.cdiv(S, ts),)

    kernel = _make_kernel(
        apply_dropout=bool(training) and DROPOUT_P > 0.0,
        ts=ts, batch=B, d_model=D,
    )

    return pl.pallas_call(
        kernel,
        out_shape=jax.ShapeDtypeStruct((S, B, D), x.dtype),
        grid=grid,
        in_specs=[
            pl.BlockSpec(memory_space=pltpu.MemorySpace.SMEM),    # seed scalar
            pl.BlockSpec((ts, B, D), lambda i: (i, 0, 0)),        # x tile
            pl.BlockSpec((ts, 1, D), lambda i: (i, 0, 0)),        # pe tile
        ],
        out_specs=pl.BlockSpec((ts, B, D), lambda i: (i, 0, 0)),
        compiler_params=pltpu.CompilerParams(
            # Seq axis is fully independent -> shard grid across v7x's 2 TCs.
            dimension_semantics=("parallel",),
            # Lift v5e's 16 MiB default; matches v6e/v7x default, safely below
            # physical VMEM everywhere.
            vmem_limit_bytes=32 * 1024 * 1024,
        ),
    )(seed_arr, x, pe)


if __name__ == "__main__":
    SEQ, BATCH = 8, 8
    key = jax.random.PRNGKey(0)
    x = jax.random.normal(key, (SEQ, BATCH, D_MODEL), dtype=jnp.float32)

    # Train-mode forward (matches the torch module's default training=True).
    out = positional_encoding_forward(x, seed=0, training=True)
    out = jax.block_until_ready(out)
    assert out.shape == (SEQ, BATCH, D_MODEL)
    assert out.dtype == jnp.float32
    assert bool(jnp.all(jnp.isfinite(out)))

    # Dropout sanity: roughly 10% of elements zeroed.
    drop_frac = float(jnp.mean(out == 0.0))
    assert abs(drop_frac - DROPOUT_P) < 0.03, drop_frac

    # Kept elements equal (x + pe) / (1 - p) exactly.
    ref_train = (x + _pe_table()[:SEQ]) * _KEEP_SCALE
    kept = out != 0.0
    assert bool(jnp.allclose(jnp.where(kept, out, ref_train), ref_train,
                             atol=1e-5)), "train path mismatch on kept elements"

    # Eval fast path matches x + pe exactly (no dropout).
    out_eval = jax.block_until_ready(positional_encoding_forward(x, training=False))
    ref_eval = x + _pe_table()[:SEQ]
    assert bool(jnp.allclose(out_eval, ref_eval, atol=1e-6)), "eval path mismatch"

    print("KERNEL_OK")
</pallas_src>

<mosaic_0001>
module attributes {stable_mosaic.version = 11 : i64} {
  func.func @kernel(%arg0: i32, %arg1: memref<1xi32, #tpu.memory_space<smem>>, %arg2: memref<8x8x512xf32, #tpu.memory_space<vmem>>, %arg3: memref<8x1x512xf32, #tpu.memory_space<vmem>>, %arg4: memref<8x8x512xf32, #tpu.memory_space<vmem>>) attributes {dimension_semantics = [#tpu.dimension_semantics<parallel>], iteration_bounds = array<i64: 1>, scalar_prefetch = 0 : i64, scratch_operands = 0 : i64, tpu.core_type = #tpu.core_type<tc>, window_params = [{transform_indices = @transform_0, window_bounds = array<i64: 1>}, {transform_indices = @transform_1, window_bounds = array<i64: 8, 8, 512>}, {transform_indices = @transform_2, window_bounds = array<i64: 8, 1, 512>}, {transform_indices = @transform_3, window_bounds = array<i64: 8, 8, 512>}]} {
    %c0 = arith.constant 0 : index
    %c0_0 = arith.constant 0 : index
    %c0_1 = arith.constant 0 : index
    %0 = vector.load %arg2[%c0, %c0_0, %c0_1] : memref<8x8x512xf32, #tpu.memory_space<vmem>>, vector<8x8x512xf32>
    %c0_2 = arith.constant 0 : index
    %c0_3 = arith.constant 0 : index
    %c0_4 = arith.constant 0 : index
    %1 = vector.load %arg3[%c0_2, %c0_3, %c0_4] : memref<8x1x512xf32, #tpu.memory_space<vmem>>, vector<8x1x512xf32>
    %2 = vector.broadcast %1 : vector<8x1x512xf32> to vector<8x8x512xf32>
    %3 = arith.addf %0, %2 : vector<8x8x512xf32>
    %4 = tpu.iota {dimensions = array<i32: 0>} : vector<8x8x512xi32>
    %5 = tpu.iota {dimensions = array<i32: 1>} : vector<8x8x512xi32>
    %6 = tpu.iota {dimensions = array<i32: 2>} : vector<8x8x512xi32>
    %c8_i32 = arith.constant 8 : i32
    %7 = arith.muli %arg0, %c8_i32 : i32
    %8 = vector.broadcast %7 : i32 to vector<8x8x512xi32>
    %9 = arith.addi %8, %4 : vector<8x8x512xi32>
    %c8_i32_5 = arith.constant 8 : i32
    %10 = vector.broadcast %c8_i32_5 : i32 to vector<8x8x512xi32>
    %11 = arith.muli %9, %10 : vector<8x8x512xi32>
    %12 = arith.addi %11, %5 : vector<8x8x512xi32>
    %c512_i32 = arith.constant 512 : i32
    %13 = vector.broadcast %c512_i32 : i32 to vector<8x8x512xi32>
    %14 = arith.muli %12, %13 : vector<8x8x512xi32>
    %15 = arith.addi %14, %6 : vector<8x8x512xi32>
    %c0_6 = arith.constant 0 : index
    %16 = memref.load %arg1[%c0_6] : memref<1xi32, #tpu.memory_space<smem>>
    %c-1640531535_i32 = arith.constant -1640531535 : i32
    %17 = arith.muli %16, %c-1640531535_i32 : i32
    %c2135587861_i32 = arith.constant 2135587861 : i32
    %18 = arith.addi %17, %c2135587861_i32 : i32
    %19 = vector.broadcast %18 : i32 to vector<8x8x512xi32>
    %20 = arith.xori %15, %19 : vector<8x8x512xi32>
    %c16_i32 = arith.constant 16 : i32
    %21 = vector.broadcast %c16_i32 : i32 to vector<8x8x512xi32>
    %22 = arith.shrui %20, %21 : vector<8x8x512xi32>
    %23 = arith.xori %20, %22 : vector<8x8x512xi32>
    %c-2048144789_i32 = arith.constant -2048144789 : i32
    %24 = vector.broadcast %c-2048144789_i32 : i32 to vector<8x8x512xi32>
    %25 = arith.muli %23, %24 : vector<8x8x512xi32>
    %c13_i32 = arith.constant 13 : i32
    %26 = vector.broadcast %c13_i32 : i32 to vector<8x8x512xi32>
    %27 = arith.shrui %25, %26 : vector<8x8x512xi32>
    %28 = arith.xori %25, %27 : vector<8x8x512xi32>
    %c-1028477387_i32 = arith.constant -1028477387 : i32
    %29 = vector.broadcast %c-1028477387_i32 : i32 to vector<8x8x512xi32>
    %30 = arith.muli %28, %29 : vector<8x8x512xi32>
    %c16_i32_7 = arith.constant 16 : i32
    %31 = vector.broadcast %c16_i32_7 : i32 to vector<8x8x512xi32>
    %32 = arith.shrui %30, %31 : vector<8x8x512xi32>
    %33 = arith.xori %30, %32 : vector<8x8x512xi32>
    %c1_i32 = arith.constant 1 : i32
    %34 = vector.broadcast %c1_i32 : i32 to vector<8x8x512xi32>
    %35 = arith.shrui %33, %34 : vector<8x8x512xi32>
    %c214748365_i32 = arith.constant 214748365 : i32
    %36 = vector.broadcast %c214748365_i32 : i32 to vector<8x8x512xi32>
    %37 = arith.cmpi sge, %35, %36 : vector<8x8x512xi32>
    %cst = arith.constant 1.11111116 : f32
    %38 = vector.broadcast %cst : f32 to vector<8x8x512xf32>
    %39 = arith.mulf %3, %38 : vector<8x8x512xf32>
    %cst_8 = arith.constant 0.000000e+00 : f32
    %40 = vector.broadcast %cst_8 : f32 to vector<8x8x512xf32>
    %41 = arith.select %37, %39, %40 : vector<8x8x512xi1>, vector<8x8x512xf32>
    %c0_9 = arith.constant 0 : index
    %c0_10 = arith.constant 0 : index
    %c0_11 = arith.constant 0 : index
    %42 = vector.load %arg4[%c0_9, %c0_10, %c0_11] : memref<8x8x512xf32, #tpu.memory_space<vmem>>, vector<8x8x512xf32>
    tpu.vector_store %arg4[%c0_9, %c0_10, %c0_11], %41 {strides = array<i32>} : memref<8x8x512xf32, #tpu.memory_space<vmem>>, vector<8x8x512xf32>,
    return
  }
  func.func @transform_0(%arg0: i32) -> i32 {
    %c0_i32 = arith.constant 0 : i32
    %c0_i32_0 = arith.constant 0 : i32
    return %c0_i32 : i32
  }
  func.func @transform_1(%arg0: i32) -> (i32, i32, i32) {
    %c0_i32 = arith.constant 0 : i32
    %c0_i32_0 = arith.constant 0 : i32
    %c0_i32_1 = arith.constant 0 : i32
    return %arg0, %c0_i32, %c0_i32_0 : i32, i32, i32
  }
  func.func @transform_2(%arg0: i32) -> (i32, i32, i32) {
    %c0_i32 = arith.constant 0 : i32
    %c0_i32_0 = arith.constant 0 : i32
    %c0_i32_1 = arith.constant 0 : i32
    return %arg0, %c0_i32, %c0_i32_0 : i32, i32, i32
  }
  func.func @transform_3(%arg0: i32) -> (i32, i32, i32) {
    %c0_i32 = arith.constant 0 : i32
    %c0_i32_0 = arith.constant 0 : i32
    %c0_i32_1 = arith.constant 0 : i32
    return %arg0, %c0_i32, %c0_i32_0 : i32, i32, i32
  }
}

</mosaic_0001>

<bundles_post_ra>
// kernel: tpu_custom_call.1
= control target key start
LH: loop header
LB: loop body
LE: loop exit
PB: predicated region body
PF: predicated region fallthrough
CT: control target
= control target key end

     0   :  { %9 = vsyncpa [#allocation4], 0  ;;  %s1162_s0 = inlined_call_operand.<no memory space> [shape: s32[1], index: 0, kind: input, shape index: {}]   ;;  %s1163_s1 = inlined_call_operand.hbm [shape: f32[8,8,512], index: 1, kind: input, shape index: {}]   ;;  %s1164_s2 = inlined_call_operand.hbm [shape: f32[5000,1,512], index: 2, kind: input, shape index: {}]   ;;  %s1165_s3 = inlined_call_operand.hbm [shape: f32[8,8,512], index: 3, kind: output, shape index: {}]  }
   0x1   :  { %10 = vsyncpa [#allocation7], 0 }
   0x2   :  { %11 = vsyncpa [#allocation5], 0  ;;  %s905_s12 = smov [#allocation3]   ;;  %s833_s16 = scalar_lea.hbm %s1163_s1, 4096 }
   0x3   :  { %s19_s13 = sshll.u32 %s905_s12, 4  ;;  %p834_p0 = scmp.ne.s32.totalorder %s1163_s1, %s833_s16  ;;  %s20_s13 = int_to_ptr.vmem [resolvable:$true] %s19_s13 }
   0x4   :  { %p837_p1 = scmp.lt.u32.totalorder %s833_s16, %s1163_s1 }
   0x6   :  { %p839_p2 = pnand %p837_p1, %p834_p0 }
   0x8   :  { %842 = shalt.err (!%p839_p2)
}
   0x9   :  { %s843_s21 = scalar_lea.vmem %s20_s13, 4096  ;;  %p848_p4 = scmp.lt.s32.totalorder %s20_s13, %s20_s13 }
   0xa   :  { %p844_p3 = scmp.ne.s32.totalorder %s20_s13, %s843_s21  ;;  %p849_p5 = scmp.lt.s32.totalorder %s843_s21, %s843_s21 }
   0xc   :  { %p850_p6 = por %p849_p5, %p848_p4 }
   0xe   :  { %p851_p7 = pnand %p850_p6, %p844_p3 }
  0x10   :  { %854 = shalt.err (!%p851_p7)
}
  0x11   :  { %s906_s22 = smov 512   ;;  %s907_s23 = smov 32  }
  0x12   :  { %25 = dma.hbm_to_vmem [thread:$0]  %s1163_s1, 4096, %s20_s13, [#allocation4], %s906_s22, %s906_s22, %s907_s23  }
  0x13   :  { %s908_s26 = smov [#allocation6]   ;;  %s855_s30 = scalar_lea.hbm %s1164_s2, 512 }
  0x14   :  { %s31_s27 = sshll.u32 %s908_s26, 4  ;;  %p856_p8 = scmp.ne.s32.totalorder %s1164_s2, %s855_s30  ;;  %s32_s27 = int_to_ptr.vmem [resolvable:$true] %s31_s27 }
  0x15   :  { %s857_s8 = scalar_lea.hbm %s1164_s2, 320000  ;;  %p859_p10 = scmp.lt.u32.totalorder %s855_s30, %s1164_s2 }
  0x16   :  { %p858_p9 = scmp.lt.u32.totalorder %s857_s8, %s855_s30 }
  0x18   :  { %p860_p11 = por %p859_p10, %p858_p9 }
  0x1a   :  { %p861_p12 = pnand %p860_p11, %p856_p8 }
  0x1c   :  { %864 = shalt.err (!%p861_p12)
}
  0x1d   :  { %s865_s1 = scalar_lea.vmem %s32_s27, 512  ;;  %p870_p0 = scmp.lt.s32.totalorder %s32_s27, %s32_s27 }
  0x1e   :  { %p866_p13 = scmp.ne.s32.totalorder %s32_s27, %s865_s1  ;;  %p871_p1 = scmp.lt.s32.totalorder %s865_s1, %s865_s1 }
  0x20   :  { %p872_p2 = por %p871_p1, %p870_p0 }
  0x22   :  { %p873_p3 = pnand %p872_p2, %p866_p13 }
  0x24   :  { %876 = shalt.err (!%p873_p3)
}
  0x25   :  { %s909_s11 = smov 64   ;;  %s910_s12 = smov 4  }
  0x26   :  { %37 = dma.hbm_to_vmem [thread:$0]  %s1164_s2, 512, %s32_s27, [#allocation7], %s909_s11, %s909_s11, %s910_s12  }
  0x27   :  { %899 = dma.done.wait [#allocation4], 4096  }
  0x28   :  { %900 = vsyncadd [#allocation4], 4294963200 }
  0x29   :  { %901 = dma.done.wait [#allocation7], 512  }
  0x2a   :  { %902 = vsyncadd [#allocation7], 4294966784  ;;  %v92_v0 = vlaneseq  ;;  %s357_s17 = smul.u32 2654435761, %s1162_s0  ;;  %v76_v14 = vld [vmem:[#allocation6] sm:$0xf] }
  0x2b   :  { %v44_v17 = vld [vmem:[#allocation3] sm:$0xff]  ;;  %v45_v22 = vld [vmem:[#allocation3 + $0x8] sm:$0xff]  ;;  %v46_v29 = vld [vmem:[#allocation3 + $0x10] sm:$0xff]  ;;  %s911_s0 = smov [#allocation8]  }
  0x2c   :  { %v965_v1 = vshrl.u32 %v92_v0, 7  ;;  %v967_v2 = vand.u32 127, %v92_v0  ;;  %s358_s18 = sadd.s32 2135587861, %s357_s17  ;;  %v47_v30 = vld [vmem:[#allocation3 + $0x18] sm:$0xff]  ;;  %s813_s2 = sshll.u32 %s911_s0, 4  ;;  %s814_s2 = int_to_ptr.vmem [resolvable:$true] %s813_s2 }
  0x2d   :  { %v969_v3 = vstv %s358_s18  ;;  %v1009_v45 = vld [vmem:[#allocation6 + $0x4] sm:$0xf]  ;;  %s877_s19 = scalar_lea.vmem %s814_s2, 4096  ;;  %p882_p5 = scmp.lt.s32.totalorder %s814_s2, %s814_s2 }
  0x2e   :  { %v972_v4 = vsub.s32 0, %v965_v1  ;;  %v316_v5 = vmul.u32 512, %v965_v1  ;;  %v976_v6 = vsub.s32 1, %v965_v1  ;;  %v979_v7 = vadd.s32 128, %v967_v2  ;;  %p878_p4 = scmp.ne.s32.totalorder %s814_s2, %s877_s19  ;;  %p883_p6 = scmp.lt.s32.totalorder %s877_s19, %s877_s19 }
  0x2f   :  { %v982_v8 = vsub.s32 2, %v965_v1  ;;  %v985_v9 = vadd.s32 256, %v967_v2  ;;  %v988_v10 = vsub.s32 3, %v965_v1  ;;  %v991_v11 = vadd.s32 384, %v967_v2 }
  0x30   :  { %v324_v12 = vadd.s32 %v316_v5, %v967_v2  ;;  %v325_v13 = vadd.s32 %v316_v5, %v979_v7  ;;  %v95_v18 = vrot.slane %v76_v14, %v972_v4  ;;  %v99_v20 = vrot.slane %v76_v14, %v976_v6  ;;  %p884_p7 = por %p883_p6, %p882_p5 }
  0x31   :  { %v326_v15 = vadd.s32 %v316_v5, %v985_v9  ;;  %v327_v16 = vadd.s32 %v316_v5, %v991_v11  ;;  %v103_v23 = vrot.slane %v76_v14, %v982_v8  ;;  %v107_v25 = vrot.slane %v76_v14, %v988_v10 }
  0x32   :  { %v360_v19 = vxor.u32 %v969_v3, %v324_v12  ;;  %v361_v21 = vxor.u32 %v969_v3, %v325_v13  ;;  %v252_v31 = vadd.f32 %v95_v18, %v44_v17  ;;  %v309_v34 = vadd.s32 8, %v965_v1  ;;  %v48_v13 = vld [vmem:[#allocation3 + $0x20] sm:$0xff]  ;;  %p885_p8 = pnand %p884_p7, %p878_p4 }
  0x33   :  { %v362_v24 = vxor.u32 %v969_v3, %v326_v15  ;;  %v363_v26 = vxor.u32 %v969_v3, %v327_v16  ;;  %v253_v36 = vadd.f32 %v99_v20, %v45_v22  ;;  %v1007_v38 = vadd.s32 16, %v965_v1 }
  0x34   :  { %v392_v27 = vshrl.u32 %v360_v19, 16  ;;  %v393_v28 = vshrl.u32 %v361_v21, 16  ;;  %v254_v39 = vadd.f32 %v103_v23, %v46_v29  ;;  %v255_v41 = vadd.f32 %v107_v25, %v47_v30 }
  0x35   :  { %v394_v32 = vshrl.u32 %v362_v24, 16  ;;  %v395_v33 = vshrl.u32 %v363_v26, 16  ;;  %v712_v46 = vmul.f32 1.1111112, %v252_v31  ;;  %v713_v51 = vmul.f32 1.1111112, %v253_v36 }
  0x36   :  { %v424_v35 = vxor.u32 %v392_v27, %v360_v19  ;;  %v425_v37 = vxor.u32 %v393_v28, %v361_v21  ;;  %v317_v52 = vmul.u32 512, %v309_v34  ;;  %v714_v54 = vmul.f32 1.1111112, %v254_v39  ;;  %v49_v34 = vld [vmem:[#allocation3 + $0x28] sm:$0xff] }
  0x37   :  { %v426_v40 = vxor.u32 %v394_v32, %v362_v24  ;;  %v427_v42 = vxor.u32 %v395_v33, %v363_v26  ;;  %v715_v56 = vmul.f32 1.1111112, %v255_v41  ;;  %v111_v59 = vrot.slane %v1009_v45, %v972_v4 }
  0x38   :  { %v456_v43 = vmul.u32 2246822507, %v424_v35  ;;  %v457_v44 = vmul.u32 2246822507, %v425_v37  ;;  %v328_v60 = vadd.s32 %v317_v52, %v967_v2  ;;  %v115_v63 = vrot.slane %v1009_v45, %v976_v6 }
  0x39   :  { %v458_v47 = vmul.u32 2246822507, %v426_v40  ;;  %v459_v48 = vmul.u32 2246822507, %v427_v42  ;;  %v329_v0 = vadd.s32 %v317_v52, %v979_v7  ;;  %v330_v15 = vadd.s32 %v317_v52, %v985_v9 }
  0x3a   :  { %v488_v49 = vshrl.u32 %v456_v43, 13  ;;  %v489_v50 = vshrl.u32 %v457_v44, 13  ;;  %v364_v14 = vxor.u32 %v969_v3, %v328_v60  ;;  %v119_v19 = vrot.slane %v1009_v45, %v982_v8 }
  0x3b   :  { %v490_v53 = vshrl.u32 %v458_v47, 13  ;;  %v491_v55 = vshrl.u32 %v459_v48, 13  ;;  %v365_v18 = vxor.u32 %v969_v3, %v329_v0  ;;  %v366_v23 = vxor.u32 %v969_v3, %v330_v15 }
  0x3c   :  { %v520_v57 = vxor.u32 %v488_v49, %v456_v43  ;;  %v521_v58 = vxor.u32 %v489_v50, %v457_v44  ;;  %v396_v22 = vshrl.u32 %v364_v14, 16  ;;  %v256_v26 = vadd.f32 %v111_v59, %v48_v13  ;;  %v50_v50 = vld [vmem:[#allocation3 + $0x30] sm:$0xff] }
  0x3d   :  { %v522_v61 = vxor.u32 %v490_v53, %v458_v47  ;;  %v523_v62 = vxor.u32 %v491_v55, %v459_v48  ;;  %v397_v27 = vshrl.u32 %v365_v18, 16  ;;  %v398_v31 = vshrl.u32 %v366_v23, 16 }
  0x3e   :  { %v552_v5 = vmul.u32 3266489909, %v520_v57  ;;  %v553_v12 = vmul.u32 3266489909, %v521_v58  ;;  %v428_v30 = vxor.u32 %v396_v22, %v364_v14  ;;  %v331_v36 = vadd.s32 %v317_v52, %v991_v11  ;;  %v1035_v22 = vld [vmem:[#allocation6 + $0x8] sm:$0xf] }
  0x3f   :  { %v554_v16 = vmul.u32 3266489909, %v522_v61  ;;  %v555_v17 = vmul.u32 3266489909, %v523_v62  ;;  %v429_v35 = vxor.u32 %v397_v27, %v365_v18  ;;  %v430_v41 = vxor.u32 %v398_v31, %v366_v23 }
  0x40   :  { %v584_v20 = vshrl.u32 %v552_v5, 16  ;;  %v585_v21 = vshrl.u32 %v553_v12, 16  ;;  %v460_v40 = vmul.u32 2246822507, %v428_v30  ;;  %v367_v47 = vxor.u32 %v969_v3, %v331_v36 }
  0x41   :  { %v586_v24 = vshrl.u32 %v554_v16, 16  ;;  %v587_v25 = vshrl.u32 %v555_v17, 16  ;;  %v461_v44 = vmul.u32 2246822507, %v429_v35  ;;  %v257_v49 = vadd.f32 %v115_v63, %v49_v34 }
  0x42   :  { %v616_v28 = vxor.u32 %v584_v20, %v552_v5  ;;  %v617_v29 = vxor.u32 %v585_v21, %v553_v12  ;;  %v492_v48 = vshrl.u32 %v460_v40, 13  ;;  %v258_v60 = vadd.f32 %v119_v19, %v50_v50 }
  0x43   :  { %v618_v32 = vxor.u32 %v586_v24, %v554_v16  ;;  %v619_v33 = vxor.u32 %v587_v25, %v555_v17  ;;  %v493_v59 = vshrl.u32 %v461_v44, 13  ;;  %v462_v61 = vmul.u32 2246822507, %v430_v41 }
  0x44   :  { %v648_v37 = vshrl.u32 %v616_v28, 1  ;;  %v649_v39 = vshrl.u32 %v617_v29, 1  ;;  %v524_v58 = vxor.u32 %v492_v48, %v460_v40  ;;  %v399_v62 = vshrl.u32 %v367_v47, 16 }
  0x45   :  { %v650_v42 = vshrl.u32 %v618_v32, 1  ;;  %v651_v43 = vshrl.u32 %v619_v33, 1  ;;  %v1026_v0 = vadd.s32 24, %v965_v1  ;;  %v525_v5 = vxor.u32 %v493_v59, %v461_v44 }
  0x46   :  { %vm680_vm0 = vcmp.ge.s32.totalorder %v648_v37, 214748365  ;;  %vm681_vm1 = vcmp.ge.s32.totalorder %v649_v39, 214748365  ;;  %v556_v63 = vmul.u32 3266489909, %v524_v58  ;;  %v431_v13 = vxor.u32 %v399_v62, %v367_v47 }
  0x47   :  { %v744_v53 = vsel %vm680_vm0, %v712_v46, 0.0  ;;  %v745_v55 = vsel %vm681_vm1, %v713_v51, 0.0  ;;  %vm682_vm2 = vcmp.ge.s32.totalorder %v650_v42, 214748365  ;;  %vm683_vm3 = vcmp.ge.s32.totalorder %v651_v43, 214748365 }
  0x48   :  { %776 = vst [vmem:[#allocation8] sm:$0xff] %v744_v53  ;;  %777 = vst [vmem:[#allocation8 + $0x8] sm:$0xff] %v745_v55  ;;  %v746_v52 = vsel %vm682_vm2, %v714_v54, 0.0  ;;  %v747_v57 = vsel %vm683_vm3, %v715_v56, 0.0  ;;  %v123_v46 = vrot.slane %v1009_v45, %v988_v10  ;;  %v318_v51 = vmul.u32 512, %v1007_v38  ;;  %v51_v56 = vld [vmem:[#allocation3 + $0x38] sm:$0xff] }
  0x49   :  { %778 = vst [vmem:[#allocation8 + $0x10] sm:$0xff] %v746_v52  ;;  %779 = vst [vmem:[#allocation8 + $0x18] sm:$0xff] %v747_v57  ;;  %v716_v12 = vmul.f32 1.1111112, %v256_v26  ;;  %v494_v54 = vshrl.u32 %v462_v61, 13  ;;  %v1032_v14 = vadd.s32 32, %v965_v1  ;;  %v127_v32 = vrot.slane %v1035_v22, %v972_v4 }
  0x4a   :  { %v588_v15 = vshrl.u32 %v556_v63, 16  ;;  %v557_v16 = vmul.u32 3266489909, %v525_v5  ;;  %v717_v17 = vmul.f32 1.1111112, %v257_v49  ;;  %v332_v18 = vadd.s32 %v318_v51, %v967_v2  ;;  %v52_v47 = vld [vmem:[#allocation3 + $0x40] sm:$0xff] }
  0x4b   :  { %v526_v19 = vxor.u32 %v494_v54, %v462_v61  ;;  %v718_v20 = vmul.f32 1.1111112, %v258_v60  ;;  %v463_v21 = vmul.u32 2246822507, %v431_v13  ;;  %v333_v45 = vadd.s32 %v318_v51, %v979_v7  ;;  %v53_v61 = vld [vmem:[#allocation3 + $0x48] sm:$0xff]  ;;  %v54_v13 = vld [vmem:[#allocation3 + $0x50] sm:$0xff] }
  0x4c   :  { %v620_v38 = vxor.u32 %v588_v15, %v556_v63  ;;  %v589_v23 = vshrl.u32 %v557_v16, 16  ;;  %v259_v24 = vadd.f32 %v123_v46, %v51_v56  ;;  %v368_v25 = vxor.u32 %v969_v3, %v332_v18 }
  0x4d   :  { %v558_v26 = vmul.u32 3266489909, %v526_v19  ;;  %v495_v27 = vshrl.u32 %v463_v21, 13  ;;  %v369_v28 = vxor.u32 %v969_v3, %v333_v45  ;;  %v334_v29 = vadd.s32 %v318_v51, %v985_v9 }
  0x4e   :  { %v652_v30 = vshrl.u32 %v620_v38, 1  ;;  %v621_v31 = vxor.u32 %v589_v23, %v557_v16  ;;  %v400_v33 = vshrl.u32 %v368_v25, 16  ;;  %v719_v40 = vmul.f32 1.1111112, %v259_v24 }
  0x4f   :  { %v590_v34 = vshrl.u32 %v558_v26, 16  ;;  %v527_v35 = vxor.u32 %v495_v27, %v463_v21  ;;  %v401_v36 = vshrl.u32 %v369_v28, 16  ;;  %v370_v37 = vxor.u32 %v969_v3, %v334_v29 }
  0x50   :  { %vm684_vm4 = vcmp.ge.s32.totalorder %v652_v30, 214748365  ;;  %v653_v39 = vshrl.u32 %v621_v31, 1  ;;  %v432_v41 = vxor.u32 %v400_v33, %v368_v25  ;;  %v131_v50 = vrot.slane %v1035_v22, %v976_v6 }
  0x51   :  { %v748_v42 = vsel %vm684_vm4, %v716_v12, 0.0  ;;  %v622_v43 = vxor.u32 %v590_v34, %v558_v26  ;;  %v559_v44 = vmul.u32 3266489909, %v527_v35  ;;  %v433_v48 = vxor.u32 %v401_v36, %v369_v28 }
  0x52   :  { %780 = vst [vmem:[#allocation8 + $0x20] sm:$0xff] %v748_v42  ;;  %vm685_vm5 = vcmp.ge.s32.totalorder %v653_v39, 214748365  ;;  %v464_v49 = vmul.u32 2246822507, %v432_v41  ;;  %v402_v53 = vshrl.u32 %v370_v37, 16  ;;  %v260_v59 = vadd.f32 %v127_v32, %v52_v47 }
  0x53   :  { %v749_v55 = vsel %vm685_vm5, %v717_v17, 0.0  ;;  %v654_v52 = vshrl.u32 %v622_v43, 1  ;;  %v591_v57 = vshrl.u32 %v559_v44, 16  ;;  %v465_v58 = vmul.u32 2246822507, %v433_v48  ;;  %v55_v41 = vld [vmem:[#allocation3 + $0x58] sm:$0xff] }
  0x54   :  { %781 = vst [vmem:[#allocation8 + $0x28] sm:$0xff] %v749_v55  ;;  %v496_v60 = vshrl.u32 %v464_v49, 13  ;;  %v434_v62 = vxor.u32 %v402_v53, %v370_v37  ;;  %v335_v63 = vadd.s32 %v318_v51, %v991_v11  ;;  %v135_v12 = vrot.slane %v1035_v22, %v982_v8  ;;  %v1052_v32 = vld [vmem:[#allocation6 + $0xc] sm:$0xf] }
  0x55   :  { %vm686_vm6 = vcmp.ge.s32.totalorder %v654_v52, 214748365  ;;  %v623_v5 = vxor.u32 %v591_v57, %v559_v44  ;;  %v497_v46 = vshrl.u32 %v465_v58, 13  ;;  %v261_v18 = vadd.f32 %v131_v50, %v53_v61 }
  0x56   :  { %v750_v54 = vsel %vm686_vm6, %v718_v20, 0.0  ;;  %v528_v56 = vxor.u32 %v496_v60, %v464_v49  ;;  %v466_v15 = vmul.u32 2246822507, %v434_v62  ;;  %v371_v16 = vxor.u32 %v969_v3, %v335_v63 }
  0x57   :  { %782 = vst [vmem:[#allocation8 + $0x30] sm:$0xff] %v750_v54  ;;  %v655_v17 = vshrl.u32 %v623_v5, 1  ;;  %v529_v19 = vxor.u32 %v497_v46, %v465_v58  ;;  %v319_v21 = vmul.u32 512, %v1026_v0  ;;  %v720_v51 = vmul.f32 1.1111112, %v260_v59  ;;  %v56_v59 = vld [vmem:[#allocation3 + $0x60] sm:$0xff] }
  0x58   :  { %v560_v45 = vmul.u32 3266489909, %v528_v56  ;;  %v498_v38 = vshrl.u32 %v466_v15, 13  ;;  %v403_v23 = vshrl.u32 %v371_v16, 16  ;;  %v262_v25 = vadd.f32 %v135_v12, %v54_v13 }
  0x59   :  { %vm687_vm7 = vcmp.ge.s32.totalorder %v655_v17, 214748365  ;;  %v561_v24 = vmul.u32 3266489909, %v529_v19  ;;  %v336_v20 = vadd.s32 %v319_v21, %v967_v2  ;;  %v721_v31 = vmul.f32 1.1111112, %v261_v18 }
  0x5a   :  { %v751_v26 = vsel %vm687_vm7, %v719_v40, 0.0  ;;  %v592_v27 = vshrl.u32 %v560_v45, 16  ;;  %v530_v28 = vxor.u32 %v498_v38, %v466_v15  ;;  %v435_v29 = vxor.u32 %v403_v23, %v371_v16 }
  0x5b   :  { %783 = vst [vmem:[#allocation8 + $0x38] sm:$0xff] %v751_v26  ;;  %v593_v30 = vshrl.u32 %v561_v24, 16  ;;  %v372_v0 = vxor.u32 %v969_v3, %v336_v20  ;;  %v337_v33 = vadd.s32 %v319_v21, %v979_v7  ;;  %v139_v36 = vrot.slane %v1035_v22, %v988_v10 }
  0x5c   :  { %v624_v34 = vxor.u32 %v592_v27, %v560_v45  ;;  %v562_v35 = vmul.u32 3266489909, %v530_v28  ;;  %v467_v37 = vmul.u32 2246822507, %v435_v29  ;;  %v722_v40 = vmul.f32 1.1111112, %v262_v25 }
  0x5d   :  { %v625_v39 = vxor.u32 %v593_v30, %v561_v24  ;;  %v404_v42 = vshrl.u32 %v372_v0, 16  ;;  %v373_v43 = vxor.u32 %v969_v3, %v337_v33  ;;  %v143_v49 = vrot.slane %v1052_v32, %v972_v4 }
  0x5e   :  { %v656_v44 = vshrl.u32 %v624_v34, 1  ;;  %v594_v47 = vshrl.u32 %v562_v35, 16  ;;  %v499_v48 = vshrl.u32 %v467_v37, 13  ;;  %v338_v52 = vadd.s32 %v319_v21, %v985_v9 }
  0x5f   :  { %v657_v50 = vshrl.u32 %v625_v39, 1  ;;  %v436_v53 = vxor.u32 %v404_v42, %v372_v0  ;;  %v405_v55 = vshrl.u32 %v373_v43, 16  ;;  %v263_v57 = vadd.f32 %v139_v36, %v55_v41 }
  0x60   :  { %vm688_vm8 = vcmp.ge.s32.totalorder %v656_v44, 214748365  ;;  %v626_v22 = vxor.u32 %v594_v47, %v562_v35  ;;  %v531_v58 = vxor.u32 %v499_v48, %v467_v37  ;;  %v374_v12 = vxor.u32 %v969_v3, %v338_v52 }
  0x61   :  { %v752_v60 = vsel %vm688_vm8, %v720_v51, 0.0  ;;  %vm689_vm9 = vcmp.ge.s32.totalorder %v657_v50, 214748365  ;;  %v468_v61 = vmul.u32 2246822507, %v436_v53  ;;  %v437_v62 = vxor.u32 %v405_v55, %v373_v43  ;;  %v57_v51 = vld [vmem:[#allocation3 + $0x68] sm:$0xff] }
  0x62   :  { %784 = vst [vmem:[#allocation8 + $0x40] sm:$0xff] %v752_v60  ;;  %v753_v63 = vsel %vm689_vm9, %v721_v31, 0.0  ;;  %v658_v5 = vshrl.u32 %v626_v22, 1  ;;  %v563_v46 = vmul.u32 3266489909, %v531_v58  ;;  %v264_v54 = vadd.f32 %v143_v49, %v56_v59  ;;  %v59_v60 = vld [vmem:[#allocation3 + $0x78] sm:$0xff] }
  0x63   :  { %785 = vst [vmem:[#allocation8 + $0x48] sm:$0xff] %v753_v63  ;;  %v500_v56 = vshrl.u32 %v468_v61, 13  ;;  %v469_v13 = vmul.u32 2246822507, %v437_v62  ;;  %v339_v15 = vadd.s32 %v319_v21, %v991_v11  ;;  %v147_v17 = vrot.slane %v1052_v32, %v976_v6  ;;  %v1073_v50 = vld [vmem:[#allocation6 + $0x10] sm:$0xf] }
  0x64   :  { %vm690_vm10 = vcmp.ge.s32.totalorder %v658_v5, 214748365  ;;  %v595_v16 = vshrl.u32 %v563_v46, 16  ;;  %v406_v18 = vshrl.u32 %v374_v12, 16  ;;  %v723_v24 = vmul.f32 1.1111112, %v263_v57 }
  0x65   :  { %v754_v19 = vsel %vm690_vm10, %v722_v40, 0.0  ;;  %v532_v45 = vxor.u32 %v500_v56, %v468_v61  ;;  %v501_v38 = vshrl.u32 %v469_v13, 13  ;;  %v375_v20 = vxor.u32 %v969_v3, %v339_v15 }
  0x66   :  { %786 = vst [vmem:[#allocation8 + $0x50] sm:$0xff] %v754_v19  ;;  %v627_v23 = vxor.u32 %v595_v16, %v563_v46  ;;  %v438_v25 = vxor.u32 %v406_v18, %v374_v12  ;;  %v724_v27 = vmul.f32 1.1111112, %v264_v54  ;;  %v320_v21 = vmul.u32 512, %v1032_v14  ;;  %v58_v14 = vld [vmem:[#allocation3 + $0x70] sm:$0xff] }
  0x67   :  { %v564_v26 = vmul.u32 3266489909, %v532_v45  ;;  %v533_v28 = vxor.u32 %v501_v38, %v469_v13  ;;  %v265_v30 = vadd.f32 %v147_v17, %v57_v51  ;;  %v407_v0 = vshrl.u32 %v375_v20, 16  ;;  %v60_v45 = vld [vmem:[#allocation3 + $0x80] sm:$0xff] }
  0x68   :  { %v659_v29 = vshrl.u32 %v627_v23, 1  ;;  %v470_v31 = vmul.u32 2246822507, %v438_v25  ;;  %v151_v35 = vrot.slane %v1052_v32, %v982_v8  ;;  %v340_v36 = vadd.s32 %v320_v21, %v967_v2 }
  0x69   :  { %v596_v33 = vshrl.u32 %v564_v26, 16  ;;  %v565_v34 = vmul.u32 3266489909, %v533_v28  ;;  %v439_v39 = vxor.u32 %v407_v0, %v375_v20  ;;  %v341_v40 = vadd.s32 %v320_v21, %v979_v7 }
  0x6a   :  { %vm691_vm11 = vcmp.ge.s32.totalorder %v659_v29, 214748365  ;;  %v502_v37 = vshrl.u32 %v470_v31, 13  ;;  %v376_v44 = vxor.u32 %v969_v3, %v340_v36  ;;  %v725_v47 = vmul.f32 1.1111112, %v265_v30 }
  0x6b   :  { %v755_v41 = vsel %vm691_vm11, %v723_v24, 0.0  ;;  %v628_v42 = vxor.u32 %v596_v33, %v564_v26  ;;  %v597_v43 = vshrl.u32 %v565_v34, 16  ;;  %v471_v49 = vmul.u32 2246822507, %v439_v39 }
  0x6c   :  { %787 = vst [vmem:[#allocation8 + $0x58] sm:$0xff] %v755_v41  ;;  %v534_v48 = vxor.u32 %v502_v37, %v470_v31  ;;  %v377_v53 = vxor.u32 %v969_v3, %v341_v40  ;;  %v155_v22 = vrot.slane %v1052_v32, %v988_v10  ;;  %v408_v57 = vshrl.u32 %v376_v44, 16  ;;  %v61_v31 = vld [vmem:[#allocation3 + $0x88] sm:$0xff] }
  0x6d   :  { %v660_v55 = vshrl.u32 %v628_v42, 1  ;;  %v629_v52 = vxor.u32 %v597_v43, %v565_v34  ;;  %v266_v58 = vadd.f32 %v151_v35, %v58_v14  ;;  %v503_v61 = vshrl.u32 %v471_v49, 13 }
  0x6e   :  { %v566_v59 = vmul.u32 3266489909, %v534_v48  ;;  %v409_v62 = vshrl.u32 %v377_v53, 16  ;;  %v159_v5 = vrot.slane %v1073_v50, %v972_v4  ;;  %v440_v46 = vxor.u32 %v408_v57, %v376_v44 }
  0x6f   :  { %vm692_vm12 = vcmp.ge.s32.totalorder %v660_v55, 214748365  ;;  %v661_v63 = vshrl.u32 %v629_v52, 1  ;;  %v535_v56 = vxor.u32 %v503_v61, %v471_v49  ;;  %v267_v15 = vadd.f32 %v155_v22, %v59_v60 }
  0x70   :  { %v756_v12 = vsel %vm692_vm12, %v724_v27, 0.0  ;;  %v598_v54 = vshrl.u32 %v566_v59, 16  ;;  %v441_v13 = vxor.u32 %v409_v62, %v377_v53  ;;  %v472_v32 = vmul.u32 2246822507, %v440_v46 }
  0x71   :  { %788 = vst [vmem:[#allocation8 + $0x60] sm:$0xff] %v756_v12  ;;  %vm693_vm13 = vcmp.ge.s32.totalorder %v661_v63, 214748365  ;;  %v342_v16 = vadd.s32 %v320_v21, %v985_v9  ;;  %v567_v19 = vmul.u32 3266489909, %v535_v56  ;;  %v343_v25 = vadd.s32 %v320_v21, %v991_v11 }
  0x72   :  { %v757_v17 = vsel %vm693_vm13, %v725_v47, 0.0  ;;  %v630_v18 = vxor.u32 %v598_v54, %v566_v59  ;;  %v473_v51 = vmul.u32 2246822507, %v441_v13  ;;  %v726_v38 = vmul.f32 1.1111112, %v266_v58  ;;  %v62_v47 = vld [vmem:[#allocation3 + $0x90] sm:$0xff] }
  0x73   :  { %789 = vst [vmem:[#allocation8 + $0x68] sm:$0xff] %v757_v17  ;;  %v504_v23 = vshrl.u32 %v472_v32, 13  ;;  %v378_v24 = vxor.u32 %v969_v3, %v342_v16  ;;  %v599_v26 = vshrl.u32 %v567_v19, 16  ;;  %v163_v27 = vrot.slane %v1073_v50, %v976_v6  ;;  %v1089_v63 = vld [vmem:[#allocation6 + $0x14] sm:$0xf] }
  0x74   :  { %v662_v20 = vshrl.u32 %v630_v18, 1  ;;  %v505_v28 = vshrl.u32 %v473_v51, 13  ;;  %v268_v29 = vadd.f32 %v159_v5, %v60_v45  ;;  %v379_v33 = vxor.u32 %v969_v3, %v343_v25 }
  0x75   :  { %v536_v30 = vxor.u32 %v504_v23, %v472_v32  ;;  %v410_v0 = vshrl.u32 %v378_v24, 16  ;;  %v631_v34 = vxor.u32 %v599_v26, %v567_v19  ;;  %v727_v35 = vmul.f32 1.1111112, %v267_v15  ;;  %v63_v19 = vld [vmem:[#allocation3 + $0x98] sm:$0xff] }
  0x76   :  { %vm694_vm14 = vcmp.ge.s32.totalorder %v662_v20, 214748365  ;;  %v537_v36 = vxor.u32 %v505_v28, %v473_v51  ;;  %v411_v21 = vshrl.u32 %v379_v33, 16  ;;  %v269_v42 = vadd.f32 %v163_v27, %v61_v31 }
  0x77   :  { %v758_v37 = vsel %vm694_vm14, %v726_v38, 0.0  ;;  %v568_v39 = vmul.u32 3266489909, %v536_v30  ;;  %v442_v40 = vxor.u32 %v410_v0, %v378_v24  ;;  %v663_v41 = vshrl.u32 %v631_v34, 1  ;;  %v65_v34 = vld [vmem:[#allocation3 + $0xa8] sm:$0xff] }
  0x78   :  { %790 = vst [vmem:[#allocation8 + $0x70] sm:$0xff] %v758_v37  ;;  %v569_v43 = vmul.u32 3266489909, %v537_v36  ;;  %v313_v14 = vadd.s32 40, %v965_v1  ;;  %v167_v48 = vrot.slane %v1073_v50, %v982_v8  ;;  %v443_v53 = vxor.u32 %v411_v21, %v379_v33 }
  0x79   :  { %v600_v44 = vshrl.u32 %v568_v39, 16  ;;  %v474_v49 = vmul.u32 2246822507, %v442_v40  ;;  %vm695_vm15 = vcmp.ge.s32.totalorder %v663_v41, 214748365  ;;  %v171_v32 = vrot.slane %v1073_v50, %v988_v10  ;;  %v64_v50 = vld [vmem:[#allocation3 + $0xa0] sm:$0xff] }
  0x7a   :  { %v728_v55 = vmul.f32 1.1111112, %v268_v29  ;;  %v601_v52 = vshrl.u32 %v569_v43, 16  ;;  %v321_v22 = vmul.u32 512, %v313_v14  ;;  %v759_v57 = vsel %vm695_vm15, %v727_v35, 0.0 }
  0x7b   :  { %v632_v58 = vxor.u32 %v600_v44, %v568_v39  ;;  %v506_v59 = vshrl.u32 %v474_v49, 13  ;;  %v475_v60 = vmul.u32 2246822507, %v443_v53  ;;  %791 = vst [vmem:[#allocation8 + $0x78] sm:$0xff] %v759_v57  ;;  %v729_v62 = vmul.f32 1.1111112, %v269_v42 }
  0x7c   :  { %v633_v61 = vxor.u32 %v601_v52, %v569_v43  ;;  %v344_v5 = vadd.s32 %v321_v22, %v967_v2  ;;  %v345_v46 = vadd.s32 %v321_v22, %v979_v7  ;;  %v270_v54 = vadd.f32 %v167_v48, %v62_v47 }
  0x7d   :  { %v664_v12 = vshrl.u32 %v632_v58, 1  ;;  %v538_v56 = vxor.u32 %v506_v59, %v474_v49  ;;  %v507_v13 = vshrl.u32 %v475_v60, 13  ;;  %v175_v51 = vrot.slane %v1089_v63, %v972_v4 }
  0x7e   :  { %v665_v15 = vshrl.u32 %v633_v61, 1  ;;  %v380_v16 = vxor.u32 %v969_v3, %v344_v5  ;;  %v381_v17 = vxor.u32 %v969_v3, %v345_v46  ;;  %v346_v27 = vadd.s32 %v321_v22, %v985_v9 }
  0x7f   :  { %vm696_vm0 = vcmp.ge.s32.totalorder %v664_v12, 214748365  ;;  %v570_v18 = vmul.u32 3266489909, %v538_v56  ;;  %v539_v45 = vxor.u32 %v507_v13, %v475_v60  ;;  %v271_v28 = vadd.f32 %v171_v32, %v63_v19  ;;  %v66_v56 = vld [vmem:[#allocation3 + $0xb0] sm:$0xff] }
  0x80   :  { %v760_v38 = vsel %vm696_vm0, %v728_v55, 0.0  ;;  %vm697_vm1 = vcmp.ge.s32.totalorder %v665_v15, 214748365  ;;  %v412_v23 = vshrl.u32 %v380_v16, 16  ;;  %v413_v24 = vshrl.u32 %v381_v17, 16  ;;  %v67_v15 = vld [vmem:[#allocation3 + $0xb8] sm:$0xff] }
  0x81   :  { %792 = vst [vmem:[#allocation8 + $0x80] sm:$0xff] %v760_v38  ;;  %v761_v25 = vsel %vm697_vm1, %v729_v62, 0.0  ;;  %v602_v20 = vshrl.u32 %v570_v18, 16  ;;  %v571_v26 = vmul.u32 3266489909, %v539_v45  ;;  %v179_v30 = vrot.slane %v1089_v63, %v976_v6 }
  0x82   :  { %793 = vst [vmem:[#allocation8 + $0x88] sm:$0xff] %v761_v25  ;;  %v444_v29 = vxor.u32 %v412_v23, %v380_v16  ;;  %v445_v31 = vxor.u32 %v413_v24, %v381_v17  ;;  %v382_v35 = vxor.u32 %v969_v3, %v346_v27  ;;  %v347_v36 = vadd.s32 %v321_v22, %v991_v11  ;;  %v1110_v23 = vld [vmem:[#allocation6 + $0x18] sm:$0xf] }
  0x83   :  { %v634_v0 = vxor.u32 %v602_v20, %v570_v18  ;;  %v603_v33 = vshrl.u32 %v571_v26, 16  ;;  %v730_v37 = vmul.f32 1.1111112, %v270_v54  ;;  %v272_v39 = vadd.f32 %v175_v51, %v64_v50 }
  0x84   :  { %v476_v40 = vmul.u32 2246822507, %v444_v29  ;;  %v477_v21 = vmul.u32 2246822507, %v445_v31  ;;  %v414_v43 = vshrl.u32 %v382_v35, 16  ;;  %v383_v14 = vxor.u32 %v969_v3, %v347_v36 }
  0x85   :  { %v666_v41 = vshrl.u32 %v634_v0, 1  ;;  %v635_v42 = vxor.u32 %v603_v33, %v571_v26  ;;  %v731_v44 = vmul.f32 1.1111112, %v271_v28  ;;  %v273_v48 = vadd.f32 %v179_v30, %v65_v34 }
  0x86   :  { %v508_v47 = vshrl.u32 %v476_v40, 13  ;;  %v509_v49 = vshrl.u32 %v477_v21, 13  ;;  %v446_v55 = vxor.u32 %v414_v43, %v382_v35  ;;  %v415_v52 = vshrl.u32 %v383_v14, 16 }
  0x87   :  { %vm698_vm2 = vcmp.ge.s32.totalorder %v666_v41, 214748365  ;;  %v667_v53 = vshrl.u32 %v635_v42, 1  ;;  %v314_v59 = vadd.s32 48, %v965_v1  ;;  %v183_v60 = vrot.slane %v1089_v63, %v982_v8 }
  0x88   :  { %v762_v57 = vsel %vm698_vm2, %v730_v37, 0.0  ;;  %v540_v58 = vxor.u32 %v508_v47, %v476_v40  ;;  %v541_v22 = vxor.u32 %v509_v49, %v477_v21  ;;  %v478_v61 = vmul.u32 2246822507, %v446_v55  ;;  %v68_v37 = vld [vmem:[#allocation3 + $0xc0] sm:$0xff] }
  0x89   :  { %794 = vst [vmem:[#allocation8 + $0x90] sm:$0xff] %v762_v57  ;;  %vm699_vm3 = vcmp.ge.s32.totalorder %v667_v53, 214748365  ;;  %v447_v62 = vxor.u32 %v415_v52, %v383_v14  ;;  %v187_v54 = vrot.slane %v1089_v63, %v988_v10  ;;  %v322_v16 = vmul.u32 512, %v314_v59 }
  0x8a   :  { %v763_v5 = vsel %vm699_vm3, %v731_v44, 0.0  ;;  %v572_v46 = vmul.u32 3266489909, %v540_v58  ;;  %v573_v12 = vmul.u32 3266489909, %v541_v22  ;;  %v510_v13 = vshrl.u32 %v478_v61, 13 }
  0x8b   :  { %795 = vst [vmem:[#allocation8 + $0x98] sm:$0xff] %v763_v5  ;;  %v479_v32 = vmul.u32 2246822507, %v447_v62  ;;  %v732_v18 = vmul.f32 1.1111112, %v272_v39  ;;  %v348_v24 = vadd.s32 %v322_v16, %v967_v2  ;;  %v349_v25 = vadd.s32 %v322_v16, %v979_v7 }
  0x8c   :  { %v604_v17 = vshrl.u32 %v572_v46, 16  ;;  %v605_v19 = vshrl.u32 %v573_v12, 16  ;;  %v733_v45 = vmul.f32 1.1111112, %v273_v48  ;;  %v542_v51 = vxor.u32 %v510_v13, %v478_v61 }
  0x8d   :  { %v511_v38 = vshrl.u32 %v479_v32, 13  ;;  %v274_v26 = vadd.f32 %v183_v60, %v66_v56  ;;  %v275_v50 = vadd.f32 %v187_v54, %v67_v15  ;;  %v384_v29 = vxor.u32 %v969_v3, %v348_v24  ;;  %v69_v56 = vld [vmem:[#allocation3 + $0xc8] sm:$0xff] }
  0x8e   :  { %v636_v20 = vxor.u32 %v604_v17, %v572_v46  ;;  %v637_v63 = vxor.u32 %v605_v19, %v573_v12  ;;  %v574_v27 = vmul.u32 3266489909, %v542_v51  ;;  %v385_v30 = vxor.u32 %v969_v3, %v349_v25  ;;  %v70_v51 = vld [vmem:[#allocation3 + $0xd0] sm:$0xff] }
  0x8f   :  { %v543_v28 = vxor.u32 %v511_v38, %v479_v32  ;;  %v191_v33 = vrot.slane %v1110_v23, %v972_v4  ;;  %v350_v34 = vadd.s32 %v322_v16, %v985_v9  ;;  %v416_v39 = vshrl.u32 %v384_v29, 16 }
  0x90   :  { %v668_v31 = vshrl.u32 %v636_v20, 1  ;;  %v669_v0 = vshrl.u32 %v637_v63, 1  ;;  %v606_v35 = vshrl.u32 %v574_v27, 16  ;;  %v417_v40 = vshrl.u32 %v385_v30, 16 }
  0x91   :  { %v575_v36 = vmul.u32 3266489909, %v543_v28  ;;  %v734_v21 = vmul.f32 1.1111112, %v274_v26  ;;  %v386_v41 = vxor.u32 %v969_v3, %v350_v34  ;;  %v448_v47 = vxor.u32 %v416_v39, %v384_v29 }
  0x92   :  { %vm700_vm4 = vcmp.ge.s32.totalorder %v668_v31, 214748365  ;;  %vm701_vm5 = vcmp.ge.s32.totalorder %v669_v0, 214748365  ;;  %v638_v14 = vxor.u32 %v606_v35, %v574_v27  ;;  %v449_v48 = vxor.u32 %v417_v40, %v385_v30 }
  0x93   :  { %v764_v42 = vsel %vm700_vm4, %v732_v18, 0.0  ;;  %v765_v43 = vsel %vm701_vm5, %v733_v45, 0.0  ;;  %v607_v44 = vshrl.u32 %v575_v36, 16  ;;  %v418_v49 = vshrl.u32 %v386_v41, 16 }
  0x94   :  { %796 = vst [vmem:[#allocation8 + $0xa0] sm:$0xff] %v764_v42  ;;  %797 = vst [vmem:[#allocation8 + $0xa8] sm:$0xff] %v765_v43  ;;  %v351_v53 = vadd.s32 %v322_v16, %v991_v11  ;;  %v670_v55 = vshrl.u32 %v638_v14, 1  ;;  %v735_v57 = vmul.f32 1.1111112, %v275_v50  ;;  %v276_v58 = vadd.f32 %v191_v33, %v68_v37 }
  0x95   :  { %v639_v52 = vxor.u32 %v607_v44, %v575_v36  ;;  %v480_v22 = vmul.u32 2246822507, %v448_v47  ;;  %v481_v59 = vmul.u32 2246822507, %v449_v48  ;;  %v450_v60 = vxor.u32 %v418_v49, %v386_v41  ;;  %v71_v41 = vld [vmem:[#allocation3 + $0xd8] sm:$0xff] }
  0x96   :  { %v387_v61 = vxor.u32 %v969_v3, %v351_v53  ;;  %vm702_vm6 = vcmp.ge.s32.totalorder %v670_v55, 214748365  ;;  %v195_v5 = vrot.slane %v1110_v23, %v976_v6  ;;  %v315_v46 = vadd.s32 56, %v965_v1 }
  0x97   :  { %v671_v62 = vshrl.u32 %v639_v52, 1  ;;  %v766_v12 = vsel %vm702_vm6, %v734_v21, 0.0  ;;  %v512_v54 = vshrl.u32 %v480_v22, 13  ;;  %v513_v13 = vshrl.u32 %v481_v59, 13 }
  0x98   :  { %v482_v15 = vmul.u32 2246822507, %v450_v60  ;;  %798 = vst [vmem:[#allocation8 + $0xb0] sm:$0xff] %v766_v12  ;;  %v199_v32 = vrot.slane %v1110_v23, %v982_v8  ;;  %v419_v16 = vshrl.u32 %v387_v61, 16  ;;  %v323_v17 = vmul.u32 512, %v315_v46 }
  0x99   :  { %vm703_vm7 = vcmp.ge.s32.totalorder %v671_v62, 214748365  ;;  %v544_v19 = vxor.u32 %v512_v54, %v480_v22  ;;  %v545_v45 = vxor.u32 %v513_v13, %v481_v59  ;;  %v277_v24 = vadd.f32 %v195_v5, %v69_v56 }
  0x9a   :  { %v767_v18 = vsel %vm703_vm7, %v735_v57, 0.0  ;;  %v514_v38 = vshrl.u32 %v482_v15, 13  ;;  %v451_v1 = vxor.u32 %v419_v16, %v387_v61  ;;  %v352_v25 = vadd.s32 %v323_v17, %v967_v2  ;;  %v1135_v57 = vld [vmem:[#allocation6 + $0x1c] sm:$0xf] }
  0x9b   :  { %799 = vst [vmem:[#allocation8 + $0xb8] sm:$0xff] %v767_v18  ;;  %v353_v20 = vadd.s32 %v323_v17, %v979_v7  ;;  %v576_v63 = vmul.u32 3266489909, %v544_v19  ;;  %v736_v26 = vmul.f32 1.1111112, %v276_v58  ;;  %v278_v28 = vadd.f32 %v199_v32, %v70_v51 }
  0x9c   :  { %v577_v50 = vmul.u32 3266489909, %v545_v45  ;;  %v546_v27 = vxor.u32 %v514_v38, %v482_v15  ;;  %v483_v29 = vmul.u32 2246822507, %v451_v1  ;;  %v388_v30 = vxor.u32 %v969_v3, %v352_v25  ;;  %v72_v15 = vld [vmem:[#allocation3 + $0xe0] sm:$0xff] }
  0x9d   :  { %v389_v31 = vxor.u32 %v969_v3, %v353_v20  ;;  %v608_v0 = vshrl.u32 %v576_v63, 16  ;;  %v203_v35 = vrot.slane %v1110_v23, %v988_v10  ;;  %v737_v36 = vmul.f32 1.1111112, %v277_v24 }
  0x9e   :  { %v609_v33 = vshrl.u32 %v577_v50, 16  ;;  %v578_v34 = vmul.u32 3266489909, %v546_v27  ;;  %v515_v2 = vshrl.u32 %v483_v29, 13  ;;  %v420_v37 = vshrl.u32 %v388_v30, 16  ;;  %v74_v27 = vld [vmem:[#allocation3 + $0xf0] sm:$0xff] }
  0x9f   :  { %v421_v7 = vshrl.u32 %v389_v31, 16  ;;  %v640_v39 = vxor.u32 %v608_v0, %v576_v63  ;;  %v354_v42 = vadd.s32 %v323_v17, %v985_v9  ;;  %v738_v43 = vmul.f32 1.1111112, %v278_v28 }
  0xa0   :  { %v641_v40 = vxor.u32 %v609_v33, %v577_v50  ;;  %v610_v21 = vshrl.u32 %v578_v34, 16  ;;  %v547_v14 = vxor.u32 %v515_v2, %v483_v29  ;;  %v452_v44 = vxor.u32 %v420_v37, %v388_v30 }
  0xa1   :  { %v453_v47 = vxor.u32 %v421_v7, %v389_v31  ;;  %v672_v48 = vshrl.u32 %v640_v39, 1  ;;  %v390_v55 = vxor.u32 %v969_v3, %v354_v42  ;;  %v279_v23 = vadd.f32 %v203_v35, %v71_v41  ;;  %v75_v39 = vld [vmem:[#allocation3 + $0xf8] sm:$0xff] }
  0xa2   :  { %v673_v49 = vshrl.u32 %v641_v40, 1  ;;  %v642_v53 = vxor.u32 %v610_v21, %v578_v34  ;;  %v579_v52 = vmul.u32 3266489909, %v547_v14  ;;  %v484_v58 = vmul.u32 2246822507, %v452_v44 }
  0xa3   :  { %v355_v22 = vadd.s32 %v323_v17, %v991_v11  ;;  %vm704_vm8 = vcmp.ge.s32.totalorder %v672_v48, 214748365  ;;  %v422_v9 = vshrl.u32 %v390_v55, 16  ;;  %v207_v46 = vrot.slane %v1135_v57, %v972_v4  ;;  %v73_v4 = vld [vmem:[#allocation3 + $0xe8] sm:$0xff] }
  0xa4   :  { %vm705_vm9 = vcmp.ge.s32.totalorder %v673_v49, 214748365  ;;  %v674_v59 = vshrl.u32 %v642_v53, 1  ;;  %v768_v60 = vsel %vm704_vm8, %v736_v26, 0.0  ;;  %v611_v62 = vshrl.u32 %v579_v52, 16 }
  0xa5   :  { %v769_v61 = vsel %vm705_vm9, %v737_v36, 0.0  ;;  %v516_v5 = vshrl.u32 %v484_v58, 13  ;;  %800 = vst [vmem:[#allocation8 + $0xc0] sm:$0xff] %v768_v60  ;;  %v485_v12 = vmul.u32 2246822507, %v453_v47  ;;  %v454_v54 = vxor.u32 %v422_v9, %v390_v55 }
  0xa6   :  { %801 = vst [vmem:[#allocation8 + $0xc8] sm:$0xff] %v769_v61  ;;  %vm706_vm10 = vcmp.ge.s32.totalorder %v674_v59, 214748365  ;;  %v643_v13 = vxor.u32 %v611_v62, %v579_v52  ;;  %v391_v32 = vxor.u32 %v969_v3, %v355_v22  ;;  %v739_v16 = vmul.f32 1.1111112, %v279_v23 }
  0xa7   :  { %v770_v56 = vsel %vm706_vm10, %v738_v43, 0.0  ;;  %v548_v11 = vxor.u32 %v516_v5, %v484_v58  ;;  %v517_v17 = vshrl.u32 %v485_v12, 13  ;;  %v486_v18 = vmul.u32 2246822507, %v454_v54 }
  0xa8   :  { %802 = vst [vmem:[#allocation8 + $0xd0] sm:$0xff] %v770_v56  ;;  %v675_v19 = vshrl.u32 %v643_v13, 1  ;;  %v211_v51 = vrot.slane %v1135_v57, %v976_v6  ;;  %v423_v38 = vshrl.u32 %v391_v32, 16  ;;  %v280_v24 = vadd.f32 %v207_v46, %v72_v15 }
  0xa9   :  { %v580_v45 = vmul.u32 3266489909, %v548_v11  ;;  %v549_v1 = vxor.u32 %v517_v17, %v485_v12  ;;  %v518_v25 = vshrl.u32 %v486_v18, 13  ;;  %v215_v63 = vrot.slane %v1135_v57, %v982_v8 }
  0xaa   :  { %vm707_vm11 = vcmp.ge.s32.totalorder %v675_v19, 214748365  ;;  %v455_v3 = vxor.u32 %v423_v38, %v391_v32  ;;  %v281_v30 = vadd.f32 %v211_v51, %v73_v4  ;;  %v740_v6 = vmul.f32 1.1111112, %v280_v24 }
  0xab   :  { %v612_v20 = vshrl.u32 %v580_v45, 16  ;;  %v771_v26 = vsel %vm707_vm11, %v739_v16, 0.0  ;;  %v581_v50 = vmul.u32 3266489909, %v549_v1  ;;  %v550_v28 = vxor.u32 %v518_v25, %v486_v18 }
  0xac   :  { %803 = vst [vmem:[#allocation8 + $0xd8] sm:$0xff] %v771_v26  ;;  %v487_v31 = vmul.u32 2246822507, %v455_v3  ;;  %v282_v35 = vadd.f32 %v215_v63, %v74_v27  ;;  %v219_v8 = vrot.slane %v1135_v57, %v988_v10  ;;  %v741_v7 = vmul.f32 1.1111112, %v281_v30 }
  0xad   :  { %v644_v29 = vxor.u32 %v612_v20, %v580_v45  ;;  %v613_v0 = vshrl.u32 %v581_v50, 16  ;;  %v582_v33 = vmul.u32 3266489909, %v550_v28 }
  0xae   :  { %v519_v36 = vshrl.u32 %v487_v31, 13  ;;  %v742_v43 = vmul.f32 1.1111112, %v282_v35  ;;  %v283_v47 = vadd.f32 %v219_v8, %v75_v39 }
  0xaf   :  { %v676_v34 = vshrl.u32 %v644_v29, 1  ;;  %v645_v2 = vxor.u32 %v613_v0, %v581_v50  ;;  %v614_v37 = vshrl.u32 %v582_v33, 16 }
  0xb0   :  { %v551_v40 = vxor.u32 %v519_v36, %v487_v31  ;;  %v743_v10 = vmul.f32 1.1111112, %v283_v47 }
  0xb1   :  { %vm708_vm12 = vcmp.ge.s32.totalorder %v676_v34, 214748365  ;;  %v677_v41 = vshrl.u32 %v645_v2, 1  ;;  %v646_v42 = vxor.u32 %v614_v37, %v582_v33 }
  0xb2   :  { %v772_v21 = vsel %vm708_vm12, %v740_v6, 0.0  ;;  %v583_v14 = vmul.u32 3266489909, %v551_v40 }
  0xb3   :  { %804 = vst [vmem:[#allocation8 + $0xe0] sm:$0xff] %v772_v21  ;;  %vm709_vm13 = vcmp.ge.s32.totalorder %v677_v41, 214748365  ;;  %v678_v44 = vshrl.u32 %v646_v42, 1 }
  0xb4   :  { %v773_v48 = vsel %vm709_vm13, %v741_v7, 0.0  ;;  %v615_v49 = vshrl.u32 %v583_v14, 16 }
  0xb5   :  { %805 = vst [vmem:[#allocation8 + $0xe8] sm:$0xff] %v773_v48  ;;  %vm710_vm14 = vcmp.ge.s32.totalorder %v678_v44, 214748365 }
  0xb6   :  { %v774_v53 = vsel %vm710_vm14, %v742_v43, 0.0  ;;  %v647_v55 = vxor.u32 %v615_v49, %v583_v14 }
  0xb7   :  { %806 = vst [vmem:[#allocation8 + $0xf0] sm:$0xff] %v774_v53 }
  0xb8   :  { %v679_v23 = vshrl.u32 %v647_v55, 1 }
  0xba   :  { %vm711_vm15 = vcmp.ge.s32.totalorder %v679_v23, 214748365 }
  0xbb   :  { %v775_v52 = vsel %vm711_vm15, %v743_v10, 0.0 }
  0xbc   :  { %807 = vst [vmem:[#allocation8 + $0xf8] sm:$0xff] %v775_v52 }
  0xbd   :  { %888 = shalt.err (!%p885_p8)
}
  0xbe   :  { %s889_s24 = scalar_lea.hbm %s1165_s3, 4096 }
  0xbf   :  { %p890_p9 = scmp.ne.s32.totalorder %s1165_s3, %s889_s24  ;;  %p893_p10 = scmp.lt.u32.totalorder %s889_s24, %s1165_s3 }
  0xc1   :  { %p895_p11 = pnand %p893_p10, %p890_p9 }
  0xc3   :  { %898 = shalt.err (!%p895_p11)
}
  0xc4   :  { %819 = dma.vmem_to_hbm [thread:$0]  %s814_s2, 4096, %s1165_s3, [#allocation5], %s906_s22, %s906_s22, %s907_s23  }
  0xc5   :  { %903 = dma.done.wait [#allocation5], 4096  }
  0xc6   :  { %904 = vsyncadd [#allocation5], 4294963200 }
  0xc7   :  { %823 = vsyncpa [#allocation4], 1 }
  0xc8   :  { %824 = vsyncpa [#allocation7], 1 }
  0xc9   :  { %825 = vsyncpa [#allocation5], 1 }

</bundles_post_ra>
